<compile_context>
chip_gen: v7x
topology: tpu7x:2x2x1
jax: 0.10.0
libtpu: 0.0.40
codegen_flags: <defaults>
</compile_context>

<pallas_src>
import jax
import jax.numpy as jnp
from jax.experimental import pallas as pl
from jax.experimental.pallas import tpu as pltpu


def _round_up(x, m):
    return ((x + m - 1) // m) * m


def _cdiv(a, b):
    return (a + b - 1) // b


def _vmem_capacity_bytes():
    try:
        return int(pltpu.get_tpu_info().vmem_capacity_bytes)
    except Exception:
        return 64 << 20  # conservative fallback: v7x per-TensorCore VMEM


def _linear_kernel(x_ref, w_ref, b_ref, o_ref, acc_ref):
    k = pl.program_id(1)

    @pl.when(k == 0)
    def _():
        acc_ref[...] = jnp.zeros_like(acc_ref)

    # MXU matmul with f32 accumulation.
    acc_ref[...] += jnp.dot(x_ref[...], w_ref[...],
                            preferred_element_type=jnp.float32)

    @pl.when(k == pl.num_programs(1) - 1)
    def _():
        # Bias add in f32 on the accumulator, narrow (unpadded) store.
        o_ref[...] = (acc_ref[...] + b_ref[...]).astype(o_ref.dtype)


def prepare_linear_params(weight, bias, compute_dtype=None):
    """Transpose nn.Linear params once, outside the per-call hot path.

    weight: (output_dim, input_dim)   -- PyTorch nn.Linear layout
    bias:   (output_dim,)
    compute_dtype: e.g. jnp.bfloat16 for a bf16 MXU path (accumulation stays
    f32; loosen test tolerances if used).
    Returns (w_t (input_dim, output_dim), b2 (1, output_dim) f32).
    """
    w_t = jnp.asarray(weight).T
    if compute_dtype is not None:
        w_t = w_t.astype(compute_dtype)
    b2 = jnp.asarray(bias, jnp.float32).reshape(1, -1)
    return w_t, b2


def _choose_tiles(n_rows, input_dim, out_n, x_itemsize, w_itemsize,
                  out_itemsize, vmem_budget):
    # K tile: full K when moderate; otherwise the largest multiple of 128 that
    # divides input_dim (exact division keeps OOB-K garbage out of the sum).
    max_k = 2048
    tile_k = input_dim
    if input_dim > max_k:
        for cand in range(max_k, 127, -128):
            if input_dim % cand == 0:
                tile_k = cand
                break

    # M tile: byte-sized (~2 MiB of x per block) so per-grid-step overhead is
    # amortized even for narrow input_dim; >=4 M steps when n allows.
    target_x_bytes = 2 << 20
    tile_rows = max(target_x_bytes // (tile_k * x_itemsize), 8)
    tile_rows = min(tile_rows, _round_up(_cdiv(n_rows, 4), 8))
    tile_rows = min(tile_rows, _round_up(n_rows, 8))
    tile_rows = max(_round_up(tile_rows, 8), 8)

    def vmem_need(tr):
        return (2 * tr * tile_k * x_itemsize          # x (double-buffered)
                + 2 * tile_k * out_n * w_itemsize      # weight block
                + 2 * out_n * 4                        # bias
                + 2 * tr * out_n * out_itemsize        # out (double-buffered)
                + tr * out_n * 4)                      # f32 accumulator

    while vmem_need(tile_rows) > vmem_budget and tile_rows > 8:
        tile_rows = max(_round_up(tile_rows // 2, 8), 8)

    return tile_rows, tile_k, vmem_need(tile_rows)


def logistic_regression_forward(x, w_t, b2, input_dim, output_dim,
                                out_dtype=jnp.float32):
    """Pallas equivalent of LogisticRegression.forward.

    x:   any shape whose elements flatten to (-1, input_dim)
    w_t: (input_dim, output_dim)  from prepare_linear_params
    b2:  (1, output_dim) f32      from prepare_linear_params
    Returns (N, output_dim) in out_dtype.
    """
    x2d = x.reshape(-1, input_dim)                 # x.view(-1, input_dim)
    if x2d.dtype != w_t.dtype:
        x2d = x2d.astype(w_t.dtype)                # optional bf16 compute path
    n = x2d.shape[0]
    out_n = output_dim

    x_itemsize = jnp.dtype(x2d.dtype).itemsize
    w_itemsize = jnp.dtype(w_t.dtype).itemsize
    out_itemsize = jnp.dtype(out_dtype).itemsize

    vmem_cap = _vmem_capacity_bytes()
    tile_rows, tile_k, _ = _choose_tiles(
        n, input_dim, out_n, x_itemsize, w_itemsize, out_itemsize,
        vmem_budget=int(0.6 * vmem_cap))

    m_blocks = _cdiv(n, tile_rows)       # ragged last block handled by Pallas
    k_blocks = _cdiv(input_dim, tile_k)  # exact by construction of tile_k

    # Weight spec: constant block index when K fits in one block; single-buffer
    # it if it is large (halves its resident VMEM footprint).
    w_bytes = tile_k * out_n * w_itemsize
    if k_blocks == 1 and w_bytes > (1 << 20):
        w_spec = pl.BlockSpec((tile_k, out_n), lambda i, k: (0, 0),
                              pipeline_mode=pl.Buffered(1))
    else:
        w_spec = pl.BlockSpec((tile_k, out_n), lambda i, k: (k, 0))

    vmem_limit = int(0.85 * vmem_cap)    # generation-aware (v5e/v6e vs v7x)

    cost = pl.CostEstimate(
        flops=2 * n * input_dim * out_n,
        transcendentals=0,
        bytes_accessed=(n * input_dim * x_itemsize
                        + input_dim * out_n * w_itemsize
                        * (m_blocks if k_blocks > 1 else 1)
                        + out_n * 4
                        + n * out_n * out_itemsize),
    )

    out = pl.pallas_call(
        _linear_kernel,
        out_shape=jax.ShapeDtypeStruct((n, out_n), out_dtype),
        grid_spec=pltpu.PrefetchScalarGridSpec(
            num_scalar_prefetch=0,
            grid=(m_blocks, k_blocks),
            in_specs=[
                pl.BlockSpec((tile_rows, tile_k), lambda i, k: (i, k)),
                w_spec,
                pl.BlockSpec((1, out_n), lambda i, k: (0, 0)),
            ],
            out_specs=pl.BlockSpec((tile_rows, out_n), lambda i, k: (i, 0)),
            scratch_shapes=[pltpu.VMEM((tile_rows, out_n), jnp.float32)],
        ),
        compiler_params=pltpu.CompilerParams(
            dimension_semantics=("parallel", "arbitrary"),
            vmem_limit_bytes=vmem_limit,
        ),
        cost_estimate=cost,
    )(x2d, w_t, b2)

    return out


if __name__ == "__main__":
    # Module configuration (small synthetic sizes).
    input_dim = 32
    output_dim = 16

    key = jax.random.PRNGKey(0)
    kx, kw, kb = jax.random.split(key, 3)

    # Deterministic parameter init (nn.Linear shapes: W (out,in), b (out,)).
    bound = 1.0 / jnp.sqrt(jnp.float32(input_dim))
    weight = jax.random.uniform(
        kw, (output_dim, input_dim), jnp.float32, -bound, bound)
    bias = jax.random.uniform(kb, (output_dim,), jnp.float32, -bound, bound)

    # Prepare transposed params ONCE, outside the per-call hot path.
    w_t, b2 = prepare_linear_params(weight, bias)

    # Example input with extra leading dims; forward flattens via view(-1, D).
    x = jax.random.normal(kx, (2, 4, input_dim), jnp.float32)

    out = logistic_regression_forward(x, w_t, b2, input_dim, output_dim)
    out = jax.block_until_ready(out)

    # Reference check in plain JAX (exact f32 path).
    ref = x.reshape(-1, input_dim) @ weight.T + bias
    assert out.shape == (x.size // input_dim, output_dim)
    assert jnp.allclose(out, ref, atol=1e-5, rtol=1e-5)

    print("KERNEL_OK")
</pallas_src>

<mosaic_0001>
module attributes {stable_mosaic.version = 11 : i64} {
  func.func @_linear_kernel(%arg0: i32, %arg1: i32, %arg2: memref<8x32xf32, #tpu.memory_space<vmem>>, %arg3: memref<32x16xf32, #tpu.memory_space<vmem>>, %arg4: memref<1x16xf32, #tpu.memory_space<vmem>>, %arg5: memref<8x16xf32, #tpu.memory_space<vmem>>, %arg6: memref<8x16xf32, #tpu.memory_space<vmem>>) attributes {dimension_semantics = [#tpu.dimension_semantics<parallel>, #tpu.dimension_semantics<arbitrary>], iteration_bounds = array<i64: 1, 1>, scalar_prefetch = 0 : i64, scratch_operands = 1 : i64, tpu.core_type = #tpu.core_type<tc>, window_params = [{transform_indices = @transform_0, window_bounds = array<i64: 8, 32>}, {transform_indices = @transform_1, window_bounds = array<i64: 32, 16>}, {pipeline_mode = #tpu.pipeline_mode<synchronous>, transform_indices = @transform_2, window_bounds = array<i64: 1, 16>}, {transform_indices = @transform_3, window_bounds = array<i64: 8, 16>}]} {
    %c0_i32 = arith.constant 0 : i32
    %0 = arith.cmpi eq, %arg1, %c0_i32 : i32
    %1 = arith.extui %0 : i1 to i32
    %c0_i32_0 = arith.constant 0 : i32
    %2 = arith.cmpi ne, %1, %c0_i32_0 : i32
    scf.if %2 {
      %cst_10 = arith.constant 0.000000e+00 : f32
      %12 = vector.broadcast %cst_10 : f32 to vector<8x16xf32>
      %c0_11 = arith.constant 0 : index
      %c0_12 = arith.constant 0 : index
      %13 = vector.load %arg6[%c0_11, %c0_12] : memref<8x16xf32, #tpu.memory_space<vmem>>, vector<8x16xf32>
      tpu.vector_store %arg6[%c0_11, %c0_12], %12 {strides = array<i32>} : memref<8x16xf32, #tpu.memory_space<vmem>>, vector<8x16xf32>,
    } else {
    }
    %c0 = arith.constant 0 : index
    %c0_1 = arith.constant 0 : index
    %3 = vector.load %arg6[%c0, %c0_1] : memref<8x16xf32, #tpu.memory_space<vmem>>, vector<8x16xf32>
    %c0_2 = arith.constant 0 : index
    %c0_3 = arith.constant 0 : index
    %4 = vector.load %arg2[%c0_2, %c0_3] : memref<8x32xf32, #tpu.memory_space<vmem>>, vector<8x32xf32>
    %c0_4 = arith.constant 0 : index
    %c0_5 = arith.constant 0 : index
    %5 = vector.load %arg3[%c0_4, %c0_5] : memref<32x16xf32, #tpu.memory_space<vmem>>, vector<32x16xf32>
    %cst = arith.constant dense<0.000000e+00> : vector<8x16xf32>
    %6 = tpu.matmul %4, %5, %cst {dimension_numbers = #tpu.dot_dimension_numbers<[1], [0], [0], [1], [0, 0, 1, 1], [], []>} : vector<8x32xf32>, vector<32x16xf32>, vector<8x16xf32> -> vector<8x16xf32>
    %7 = arith.addf %3, %6 : vector<8x16xf32>
    %c0_6 = arith.constant 0 : index
    %c0_7 = arith.constant 0 : index
    %8 = vector.load %arg6[%c0_6, %c0_7] : memref<8x16xf32, #tpu.memory_space<vmem>>, vector<8x16xf32>
    tpu.vector_store %arg6[%c0_6, %c0_7], %7 {strides = array<i32>} : memref<8x16xf32, #tpu.memory_space<vmem>>, vector<8x16xf32>,
    %c0_i32_8 = arith.constant 0 : i32
    %9 = arith.cmpi eq, %arg1, %c0_i32_8 : i32
    %10 = arith.extui %9 : i1 to i32
    %c0_i32_9 = arith.constant 0 : i32
    %11 = arith.cmpi ne, %10, %c0_i32_9 : i32
    scf.if %11 {
      %c0_10 = arith.constant 0 : index
      %c0_11 = arith.constant 0 : index
      %12 = vector.load %arg6[%c0_10, %c0_11] : memref<8x16xf32, #tpu.memory_space<vmem>>, vector<8x16xf32>
      %c0_12 = arith.constant 0 : index
      %c0_13 = arith.constant 0 : index
      %13 = vector.load %arg4[%c0_12, %c0_13] : memref<1x16xf32, #tpu.memory_space<vmem>>, vector<1x16xf32>
      %14 = vector.broadcast %13 : vector<1x16xf32> to vector<8x16xf32>
      %15 = arith.addf %12, %14 : vector<8x16xf32>
      %c0_14 = arith.constant 0 : index
      %c0_15 = arith.constant 0 : index
      %16 = vector.load %arg5[%c0_14, %c0_15] : memref<8x16xf32, #tpu.memory_space<vmem>>, vector<8x16xf32>
      tpu.vector_store %arg5[%c0_14, %c0_15], %15 {strides = array<i32>} : memref<8x16xf32, #tpu.memory_space<vmem>>, vector<8x16xf32>,
    } else {
    }
    return
  }
  func.func @transform_0(%arg0: i32, %arg1: i32) -> (i32, i32) {
    %c0_i32 = arith.constant 0 : i32
    return %arg0, %arg1 : i32, i32
  }
  func.func @transform_1(%arg0: i32, %arg1: i32) -> (i32, i32) {
    %c0_i32 = arith.constant 0 : i32
    %c0_i32_0 = arith.constant 0 : i32
    return %arg1, %c0_i32 : i32, i32
  }
  func.func @transform_2(%arg0: i32, %arg1: i32) -> (i32, i32) {
    %c0_i32 = arith.constant 0 : i32
    %c0_i32_0 = arith.constant 0 : i32
    %c0_i32_1 = arith.constant 0 : i32
    return %c0_i32, %c0_i32_0 : i32, i32
  }
  func.func @transform_3(%arg0: i32, %arg1: i32) -> (i32, i32) {
    %c0_i32 = arith.constant 0 : i32
    %c0_i32_0 = arith.constant 0 : i32
    return %arg0, %c0_i32 : i32, i32
  }
}

</mosaic_0001>

<bundles_post_ra>
// kernel: tpu_custom_call.1
= control target key start
LH: loop header
LB: loop body
LE: loop exit
PB: predicated region body
PF: predicated region fallthrough
CT: control target
= control target key end

     0   :  { %vm19_vm0 = vcmask 130048   ;;  %v183_v3 = vmov 0.0|0.0   ;;  %v184_v6 = vmov 0.0   ;;  %s240_s0 = inlined_call_operand.vmem [shape: f32[8,32], index: 0, kind: input, shape index: {}]   ;;  %s241_s1 = inlined_call_operand.vmem [shape: f32[32,16], index: 1, kind: input, shape index: {}]   ;;  %s242_s2 = inlined_call_operand.vmem [shape: f32[1,16], index: 2, kind: input, shape index: {}]   ;;  %s243_s3 = inlined_call_operand.hbm [shape: f32[8,16], index: 3, kind: output, shape index: {}]  }
   0x1   :  { %v23_v0 = vld [vmem:[%s241_s1] sm:$0xff]  ;;  %v24_v1 = vld [vmem:[%s241_s1 + $0x8] sm:$0xff]  ;;  %v25_v2 = vld [vmem:[%s241_s1 + $0x10] sm:$0xff]  ;;  %149 = vmatprep.subr.bf16.mxu0 %v183_v3  ;;  %20 = vst.msk [vmem:[#allocation2] sm:$0xff] %vm19_vm0, %v184_v6 }
   0x2   :  { %v150_v4 = vpack.c.bf16 %v24_v1, %v23_v0  ;;  %v26_v5 = vld [vmem:[%s241_s1 + $0x18] sm:$0xff] }
   0x3   :  { %8 = vsyncpa [#allocation4], 0  ;;  %vm185_vm1 = vmmov 0   ;;  %v153_v7 = vpack.c.bf16 %v26_v5, %v25_v2  ;;  %v22_v8 = vld [vmem:[%s240_s0] sm:$0xff]  ;;  %vm27_vm2 = vcmask 261120   ;;  %s186_s23 = smov [#allocation3]  }
   0x4   :  { %146 = vmatprep.mubr.msk.f32.mxu0 %vm185_vm1, %v184_v6  ;;  %151 = vmatpush3.bf16.msra.mxu0 %v150_v4  ;;  %v132_v13 = vld [vmem:[%s242_s2] ss:$0 sm:$0xff]  ;;  %s123_s24 = sshll.u32 %s186_s23, 4  ;;  %s124_s24 = int_to_ptr.vmem [resolvable:$true] %s123_s24 }
   0x5   :  { %152 = vmatprep.subr.bf16.mxu0 %v183_v3  ;;  %s159_s0 = scalar_lea.vmem %s124_s24, 128  ;;  %p164_p1 = scmp.lt.s32.totalorder %s124_s24, %s124_s24 }
   0x6   :  { %p160_p0 = scmp.ne.s32.totalorder %s124_s24, %s159_s0  ;;  %p165_p2 = scmp.lt.s32.totalorder %s159_s0, %s159_s0 }
   0x8   :  { %154 = vmatpush3.bf16.msra.mxu0 %v153_v7  ;;  %v21_v9 = vld [vmem:[#allocation2] sm:$0xff]  ;;  %p166_p3 = por %p165_p2, %p164_p1 }
   0xa   :  { %p167_p4 = pnand %p166_p3, %p160_p0 }
   0xb   :  { %147 = vmatmul.mubr.msk.f32.vlgmr.msra.gmra.mrb[0].mxu0 %vm27_vm2, %v22_v8 }
  0xde   :  { %v97_v10 = vpop.f32.mrb[0].mxu0 }
  0xdf   :  { %v101_v11 = vadd.f32 %v97_v10, %v21_v9  ;;  %v148_v12 = vpop.f32.mrb[1].mxu0 }
  0xe1   :  { %103 = vst.msk [vmem:[#allocation2] sm:$0xff] %vm19_vm0, %v101_v11 }
  0xe8   :  { %v107_v14 = vld [vmem:[#allocation2] sm:$0xff] }
  0xe9   :  { %v115_v15 = vadd.f32 %v132_v13, %v107_v14 }
  0xeb   :  { %116 = vst.msk [vmem:[#allocation3] sm:$0xff] %vm19_vm0, %v115_v15 }
  0xec   :  { %170 = shalt.err (!%p167_p4)
}
  0xed   :  { %s171_s27 = scalar_lea.hbm %s243_s3, 128 }
  0xee   :  { %p172_p5 = scmp.ne.s32.totalorder %s243_s3, %s171_s27  ;;  %p175_p6 = scmp.lt.u32.totalorder %s171_s27, %s243_s3 }
  0xf0   :  { %p177_p7 = pnand %p175_p6, %p172_p5 }
  0xf2   :  { %180 = shalt.err (!%p177_p7)
}
  0xf3   :  { %126 = dma.vmem_to_hbm [thread:$0]  %s124_s24, 128, %s243_s3, [#allocation4]  }
  0xf4   :  { %181 = dma.done.wait [#allocation4], 128  }
  0xf5   :  { %182 = vsyncadd [#allocation4], 4294967168 }
  0xf6   :  { %130 = vsyncpa [#allocation4], 1 }

</bundles_post_ra>
